<compile_context>
chip_gen: v7x
topology: tpu7x:2x2x1
jax: 0.10.0
libtpu: 0.0.40
codegen_flags: <defaults>
</compile_context>

<pallas_src>
import jax
import jax.numpy as jnp
from jax.experimental import pallas as pl
from jax.experimental.pallas import tpu as pltpu

_MAX_BATCH_BLOCK = 2048   # lanes per grid step (multiple of 128)
_LANE = 128


def _round_up(x, m):
    return ((x + m - 1) // m) * m


def _param_net_kernel(
    x_ref,        # (f_in, blk)      f32  concatenated [windDirection; jointPos/180]
    w_in_ref,     # (n, f_in)        f32  input Linear weight (PyTorch (out, in))
    w_h_ref,      # (L, n, n)        f32  hidden Linear weights
    w_out_ref,    # (out_p, n)       f32  output Linear weight
    b_stack_ref,  # (L+1, n, 1)      f32  [b_in; b_h...] as column vectors
    b_out_ref,    # (out_p, 1)       f32
    o_ref,        # (out_p, blk)     f32
):
    num_layers = w_h_ref.shape[0]

    x = x_ref[...]                                               # (f_in, blk)

    # input layer: relu(W_in @ x + b_in)
    h = jnp.dot(w_in_ref[...], x, preferred_element_type=jnp.float32)
    h = jnp.maximum(h + b_stack_ref[0], 0.0)                     # (n, blk)

    # hidden layers: Linear -> ReLU -> Dropout (identity in eval mode)
    for l in range(num_layers):
        h = jnp.dot(w_h_ref[l], h, preferred_element_type=jnp.float32)
        h = jnp.maximum(h + b_stack_ref[l + 1], 0.0)

    # output layer (no activation); lane-dense store (batch on lane axis)
    o_ref[...] = (
        jnp.dot(w_out_ref[...], h, preferred_element_type=jnp.float32)
        + b_out_ref[...]
    )


@jax.jit
def param_net_forward(wind_direction, joint_pos, params):
    """wind_direction: (f_wd, B), joint_pos: (f_jp, B)  ->  (out_params, B)."""
    w_in, b_in, w_h, b_h, w_out, b_out = params
    f_wd, B = wind_direction.shape
    f_jp = joint_pos.shape[0]
    f_in = f_wd + f_jp
    n = w_in.shape[0]
    out_p = w_out.shape[0]
    L = w_h.shape[0]

    # One-time glue outside the hot path: scale jointPos and concatenate along
    # the feature axis (features-major, exactly as the PyTorch module does).
    x = jnp.concatenate(
        [wind_direction.astype(jnp.float32),
         joint_pos.astype(jnp.float32) * (1.0 / 180.0)],
        axis=0,
    )                                                            # (f_in, B)

    # Stack input + hidden biases into one buffer of (n, 1) columns.
    b_stack = jnp.concatenate(
        [b_in.reshape(1, n), b_h.reshape(L, n)], axis=0
    ).reshape(L + 1, n, 1).astype(jnp.float32)
    b_out2 = b_out.reshape(out_p, 1).astype(jnp.float32)
    w_in_f = w_in.astype(jnp.float32)
    w_h_f = w_h.astype(jnp.float32)
    w_out_f = w_out.astype(jnp.float32)

    # ---- batch tiling ----------------------------------------------------
    if B <= _LANE:
        # Small batch: single 128-lane block (lane-dense stores); the tiny pad
        # is negligible and keeps the block shape 128-aligned.
        blk = _LANE
        b_total = _LANE
        if b_total != B:
            x = jnp.pad(x, ((0, 0), (0, b_total - B)))
    else:
        # Large batch: multiple-of-128 block, capped at _MAX_BATCH_BLOCK, and
        # sized so grid_b >= 2 (keeps both TensorCores busy on v7x).  No
        # wrapper-side pad: the partial tail block is handled by Pallas.
        blk = min(_MAX_BATCH_BLOCK, _round_up(pl.cdiv(B, 2), _LANE))
        b_total = B
    grid_b = pl.cdiv(b_total, blk)

    n_weight_elems = (n * f_in + L * n * n + out_p * n
                      + (L + 1) * n + out_p)
    cost = pl.CostEstimate(
        flops=2 * b_total * (f_in * n + L * n * n + n * out_p),
        transcendentals=0,
        bytes_accessed=4 * (b_total * (f_in + out_p) + n_weight_elems),
    )

    y = pl.pallas_call(
        _param_net_kernel,
        out_shape=jax.ShapeDtypeStruct((out_p, b_total), jnp.float32),
        grid=(grid_b,),
        in_specs=[
            pl.BlockSpec((f_in, blk), lambda j: (0, j)),         # x: batch-tiled
            pl.BlockSpec((n, f_in), lambda j: (0, 0)),           # w_in: resident
            pl.BlockSpec((L, n, n), lambda j: (0, 0, 0)),        # w_h: resident
            pl.BlockSpec((out_p, n), lambda j: (0, 0)),          # w_out: resident
            pl.BlockSpec((L + 1, n, 1), lambda j: (0, 0, 0)),    # biases: resident
            pl.BlockSpec((out_p, 1), lambda j: (0, 0)),          # b_out: resident
        ],
        out_specs=pl.BlockSpec((out_p, blk), lambda j: (0, j)),
        compiler_params=pltpu.CompilerParams(
            dimension_semantics=("parallel",),
            vmem_limit_bytes=32 * 1024 * 1024,
        ),
        cost_estimate=cost,
    )(x, w_in_f, w_h_f, w_out_f, b_stack, b_out2)

    return y[:, :B]                                              # (out_params, B)


def init_params(key, input_parameters, output_parameters, num_layers, n_neurons):
    """Deterministic synthetic parameters (PyTorch Linear shapes: W is (out, in))."""
    keys = jax.random.split(key, 6)
    w_in = jax.random.normal(keys[0], (n_neurons, input_parameters), jnp.float32) * 0.1
    b_in = jax.random.normal(keys[1], (n_neurons,), jnp.float32) * 0.1
    w_h = jax.random.normal(keys[2], (num_layers, n_neurons, n_neurons), jnp.float32) * 0.1
    b_h = jax.random.normal(keys[3], (num_layers, n_neurons), jnp.float32) * 0.1
    w_out = jax.random.normal(keys[4], (output_parameters, n_neurons), jnp.float32) * 0.1
    b_out = jax.random.normal(keys[5], (output_parameters,), jnp.float32) * 0.1
    return (w_in, b_in, w_h, b_h, w_out, b_out)


def _reference_forward(wind_direction, joint_pos, params):
    """Pure-JAX reference mirroring the PyTorch forward (eval mode)."""
    w_in, b_in, w_h, b_h, w_out, b_out = params
    jp = joint_pos / 180.0
    x = jnp.concatenate([wind_direction, jp], axis=0).T   # (B, in_params)
    h = jax.nn.relu(x @ w_in.T + b_in)
    for l in range(w_h.shape[0]):
        h = jax.nn.relu(h @ w_h[l].T + b_h[l])
    y = h @ w_out.T + b_out
    return y.T


if __name__ == "__main__":
    # small, forward-consistent shapes:
    #   windDirection: (1, B), jointPos: (3, B)  -> input_parameters = 4
    f_wd, f_jp = 1, 3
    input_parameters = f_wd + f_jp
    output_parameters = 6
    num_layers = 2
    n_neurons = 32
    batch = 8

    key = jax.random.PRNGKey(0)
    k_wd, k_jp, k_par = jax.random.split(key, 3)

    wind_direction = jax.random.uniform(k_wd, (f_wd, batch), jnp.float32) * 360.0
    joint_pos = jax.random.uniform(k_jp, (f_jp, batch), jnp.float32) * 180.0 - 90.0
    params = init_params(k_par, input_parameters, output_parameters, num_layers, n_neurons)

    out = param_net_forward(wind_direction, joint_pos, params)
    out = jax.block_until_ready(out)

    ref = _reference_forward(wind_direction, joint_pos, params)
    assert out.shape == (output_parameters, batch), out.shape
    assert jnp.allclose(out, ref, atol=1e-5, rtol=1e-5), float(jnp.max(jnp.abs(out - ref)))

    # also exercise the multi-block (batch > 128, non-divisible) path
    batch2 = 300
    k_wd2, k_jp2 = jax.random.split(jax.random.PRNGKey(1), 2)
    wd2 = jax.random.uniform(k_wd2, (f_wd, batch2), jnp.float32) * 360.0
    jp2 = jax.random.uniform(k_jp2, (f_jp, batch2), jnp.float32) * 180.0 - 90.0
    out2 = jax.block_until_ready(param_net_forward(wd2, jp2, params))
    ref2 = _reference_forward(wd2, jp2, params)
    assert out2.shape == (output_parameters, batch2), out2.shape
    assert jnp.allclose(out2, ref2, atol=1e-5, rtol=1e-5), float(jnp.max(jnp.abs(out2 - ref2)))

    print("KERNEL_OK")
</pallas_src>

<mosaic_0001>
module attributes {stable_mosaic.version = 11 : i64} {
  func.func @_param_net_kernel(%arg0: i32, %arg1: memref<4x128xf32, #tpu.memory_space<vmem>>, %arg2: memref<32x4xf32, #tpu.memory_space<vmem>>, %arg3: memref<2x32x32xf32, #tpu.memory_space<vmem>>, %arg4: memref<6x32xf32, #tpu.memory_space<vmem>>, %arg5: memref<3x32x1xf32, #tpu.memory_space<vmem>>, %arg6: memref<6x1xf32, #tpu.memory_space<vmem>>, %arg7: memref<6x128xf32, #tpu.memory_space<vmem>>) attributes {dimension_semantics = [#tpu.dimension_semantics<parallel>], iteration_bounds = array<i64: 1>, scalar_prefetch = 0 : i64, scratch_operands = 0 : i64, tpu.core_type = #tpu.core_type<tc>, window_params = [{transform_indices = @transform_0, window_bounds = array<i64: 4, 128>}, {pipeline_mode = #tpu.pipeline_mode<synchronous>, transform_indices = @transform_1, window_bounds = array<i64: 32, 4>}, {pipeline_mode = #tpu.pipeline_mode<synchronous>, transform_indices = @transform_2, window_bounds = array<i64: 2, 32, 32>}, {pipeline_mode = #tpu.pipeline_mode<synchronous>, transform_indices = @transform_3, window_bounds = array<i64: 6, 32>}, {pipeline_mode = #tpu.pipeline_mode<synchronous>, transform_indices = @transform_4, window_bounds = array<i64: 3, 32, 1>}, {pipeline_mode = #tpu.pipeline_mode<synchronous>, transform_indices = @transform_5, window_bounds = array<i64: 6, 1>}, {transform_indices = @transform_6, window_bounds = array<i64: 6, 128>}]} {
    %c0 = arith.constant 0 : index
    %c0_0 = arith.constant 0 : index
    %0 = vector.load %arg1[%c0, %c0_0] : memref<4x128xf32, #tpu.memory_space<vmem>>, vector<4x128xf32>
    %c0_1 = arith.constant 0 : index
    %c0_2 = arith.constant 0 : index
    %1 = vector.load %arg2[%c0_1, %c0_2] : memref<32x4xf32, #tpu.memory_space<vmem>>, vector<32x4xf32>
    %cst = arith.constant dense<0.000000e+00> : vector<32x128xf32>
    %2 = tpu.matmul %1, %0, %cst {dimension_numbers = #tpu.dot_dimension_numbers<[1], [0], [0], [1], [0, 0, 1, 1], [], []>} : vector<32x4xf32>, vector<4x128xf32>, vector<32x128xf32> -> vector<32x128xf32>
    %c0_3 = arith.constant 0 : index
    %c0_4 = arith.constant 0 : index
    %c0_5 = arith.constant 0 : index
    %3 = vector.load %arg5[%c0_3, %c0_4, %c0_5] : memref<3x32x1xf32, #tpu.memory_space<vmem>>, vector<1x32x1xf32>
    %4 = vector.shape_cast %3 : vector<1x32x1xf32> to vector<32x1xf32>
    %5 = vector.broadcast %4 : vector<32x1xf32> to vector<32x128xf32>
    %6 = arith.addf %2, %5 : vector<32x128xf32>
    %cst_6 = arith.constant 0.000000e+00 : f32
    %7 = vector.broadcast %cst_6 : f32 to vector<32x128xf32>
    %8 = arith.maximumf %6, %7 : vector<32x128xf32>
    %c0_7 = arith.constant 0 : index
    %c0_8 = arith.constant 0 : index
    %c0_9 = arith.constant 0 : index
    %9 = vector.load %arg3[%c0_7, %c0_8, %c0_9] : memref<2x32x32xf32, #tpu.memory_space<vmem>>, vector<1x32x32xf32>
    %10 = vector.shape_cast %9 : vector<1x32x32xf32> to vector<32x32xf32>
    %cst_10 = arith.constant dense<0.000000e+00> : vector<32x128xf32>
    %11 = tpu.matmul %10, %8, %cst_10 {dimension_numbers = #tpu.dot_dimension_numbers<[1], [0], [0], [1], [0, 0, 1, 1], [], []>} : vector<32x32xf32>, vector<32x128xf32>, vector<32x128xf32> -> vector<32x128xf32>
    %c1 = arith.constant 1 : index
    %c0_11 = arith.constant 0 : index
    %c0_12 = arith.constant 0 : index
    %12 = vector.load %arg5[%c1, %c0_11, %c0_12] : memref<3x32x1xf32, #tpu.memory_space<vmem>>, vector<1x32x1xf32>
    %13 = vector.shape_cast %12 : vector<1x32x1xf32> to vector<32x1xf32>
    %14 = vector.broadcast %13 : vector<32x1xf32> to vector<32x128xf32>
    %15 = arith.addf %11, %14 : vector<32x128xf32>
    %cst_13 = arith.constant 0.000000e+00 : f32
    %16 = vector.broadcast %cst_13 : f32 to vector<32x128xf32>
    %17 = arith.maximumf %15, %16 : vector<32x128xf32>
    %c1_14 = arith.constant 1 : index
    %c0_15 = arith.constant 0 : index
    %c0_16 = arith.constant 0 : index
    %18 = vector.load %arg3[%c1_14, %c0_15, %c0_16] : memref<2x32x32xf32, #tpu.memory_space<vmem>>, vector<1x32x32xf32>
    %19 = vector.shape_cast %18 : vector<1x32x32xf32> to vector<32x32xf32>
    %cst_17 = arith.constant dense<0.000000e+00> : vector<32x128xf32>
    %20 = tpu.matmul %19, %17, %cst_17 {dimension_numbers = #tpu.dot_dimension_numbers<[1], [0], [0], [1], [0, 0, 1, 1], [], []>} : vector<32x32xf32>, vector<32x128xf32>, vector<32x128xf32> -> vector<32x128xf32>
    %c2 = arith.constant 2 : index
    %c0_18 = arith.constant 0 : index
    %c0_19 = arith.constant 0 : index
    %21 = vector.load %arg5[%c2, %c0_18, %c0_19] : memref<3x32x1xf32, #tpu.memory_space<vmem>>, vector<1x32x1xf32>
    %22 = vector.shape_cast %21 : vector<1x32x1xf32> to vector<32x1xf32>
    %23 = vector.broadcast %22 : vector<32x1xf32> to vector<32x128xf32>
    %24 = arith.addf %20, %23 : vector<32x128xf32>
    %cst_20 = arith.constant 0.000000e+00 : f32
    %25 = vector.broadcast %cst_20 : f32 to vector<32x128xf32>
    %26 = arith.maximumf %24, %25 : vector<32x128xf32>
    %c0_21 = arith.constant 0 : index
    %c0_22 = arith.constant 0 : index
    %27 = vector.load %arg4[%c0_21, %c0_22] : memref<6x32xf32, #tpu.memory_space<vmem>>, vector<6x32xf32>
    %cst_23 = arith.constant dense<0.000000e+00> : vector<6x128xf32>
    %28 = tpu.matmul %27, %26, %cst_23 {dimension_numbers = #tpu.dot_dimension_numbers<[1], [0], [0], [1], [0, 0, 1, 1], [], []>} : vector<6x32xf32>, vector<32x128xf32>, vector<6x128xf32> -> vector<6x128xf32>
    %c0_24 = arith.constant 0 : index
    %c0_25 = arith.constant 0 : index
    %29 = vector.load %arg6[%c0_24, %c0_25] : memref<6x1xf32, #tpu.memory_space<vmem>>, vector<6x1xf32>
    %30 = vector.broadcast %29 : vector<6x1xf32> to vector<6x128xf32>
    %31 = arith.addf %28, %30 : vector<6x128xf32>
    %c0_26 = arith.constant 0 : index
    %c0_27 = arith.constant 0 : index
    %32 = vector.load %arg7[%c0_26, %c0_27] : memref<6x128xf32, #tpu.memory_space<vmem>>, vector<6x128xf32>
    tpu.vector_store %arg7[%c0_26, %c0_27], %31 {strides = array<i32>} : memref<6x128xf32, #tpu.memory_space<vmem>>, vector<6x128xf32>,
    return
  }
  func.func @transform_0(%arg0: i32) -> (i32, i32) {
    %c0_i32 = arith.constant 0 : i32
    %c0_i32_0 = arith.constant 0 : i32
    return %c0_i32, %arg0 : i32, i32
  }
  func.func @transform_1(%arg0: i32) -> (i32, i32) {
    %c0_i32 = arith.constant 0 : i32
    %c0_i32_0 = arith.constant 0 : i32
    %c0_i32_1 = arith.constant 0 : i32
    return %c0_i32, %c0_i32_0 : i32, i32
  }
  func.func @transform_2(%arg0: i32) -> (i32, i32, i32) {
    %c0_i32 = arith.constant 0 : i32
    %c0_i32_0 = arith.constant 0 : i32
    %c0_i32_1 = arith.constant 0 : i32
    %c0_i32_2 = arith.constant 0 : i32
    return %c0_i32, %c0_i32_0, %c0_i32_1 : i32, i32, i32
  }
  func.func @transform_3(%arg0: i32) -> (i32, i32) {
    %c0_i32 = arith.constant 0 : i32
    %c0_i32_0 = arith.constant 0 : i32
    %c0_i32_1 = arith.constant 0 : i32
    return %c0_i32, %c0_i32_0 : i32, i32
  }
  func.func @transform_4(%arg0: i32) -> (i32, i32, i32) {
    %c0_i32 = arith.constant 0 : i32
    %c0_i32_0 = arith.constant 0 : i32
    %c0_i32_1 = arith.constant 0 : i32
    %c0_i32_2 = arith.constant 0 : i32
    return %c0_i32, %c0_i32_0, %c0_i32_1 : i32, i32, i32
  }
  func.func @transform_5(%arg0: i32) -> (i32, i32) {
    %c0_i32 = arith.constant 0 : i32
    %c0_i32_0 = arith.constant 0 : i32
    %c0_i32_1 = arith.constant 0 : i32
    return %c0_i32, %c0_i32_0 : i32, i32
  }
  func.func @transform_6(%arg0: i32) -> (i32, i32) {
    %c0_i32 = arith.constant 0 : i32
    %c0_i32_0 = arith.constant 0 : i32
    return %c0_i32, %arg0 : i32, i32
  }
}

</mosaic_0001>

<bundles_post_ra>
// kernel: param_net_forward.1
= control target key start
LH: loop header
LB: loop body
LE: loop exit
PB: predicated region body
PF: predicated region fallthrough
CT: control target
= control target key end

     0   :  { %vm66_vm0 = vcmask 1043456   ;;  %vm53_vm1 = vcmask 31744   ;;  %v668_v5 = vmov 0   ;;  %s814_s0 = inlined_call_operand.vmem [shape: f32[4,128], index: 0, kind: input, shape index: {}]   ;;  %s815_s1 = inlined_call_operand.vmem [shape: f32[32,4], index: 1, kind: input, shape index: {}]   ;;  %s816_s2 = inlined_call_operand.vmem [shape: f32[2,32,32], index: 2, kind: input, shape index: {}]   ;;  %s817_s3 = inlined_call_operand.vmem [shape: f32[6,32], index: 3, kind: input, shape index: {}]   ;;  %s818_s4 = inlined_call_operand.vmem [shape: f32[3,32,1], index: 4, kind: input, shape index: {}]   ;;  %s819_s5 = inlined_call_operand.vmem [shape: f32[6,1], index: 5, kind: input, shape index: {}]   ;;  %s820_s6 = inlined_call_operand.hbm [shape: f32[6,128], index: 6, kind: output, shape index: {}]  }
   0x1   :  { %v24_v0 = vld [vmem:[%s814_s0] sm:$0xf]  ;;  %v26_v2 = vld [vmem:[%s815_s1 + $0x8] sm:$0xff]  ;;  %v27_v3 = vld [vmem:[%s815_s1 + $0x10] sm:$0xff]  ;;  %642 = vset.pattern.permute.xlu0 %v668_v5  ;;  %643 = vset.pattern.permute.xlu1 %v668_v5 }
   0x2   :  { %v25_v1 = vld [vmem:[%s815_s1] sm:$0xff]  ;;  %568 = vmatprep.subr.msk.mxu0 %vm66_vm0, %v24_v0  ;;  %v31_v6 = vld [vmem:[%s818_s4 + $0x10] sm:$0xff]  ;;  %v28_v7 = vld [vmem:[%s815_s1 + $0x18] sm:$0xff] }
   0x3   :  { %570 = vmatprep.mubr.msk.f32.mxu0 %vm53_vm1, %v25_v1  ;;  %v29_v4 = vld [vmem:[%s818_s4] sm:$0xff]  ;;  %569 = vmatpush3.msk.msra.mxu0 %vm66_vm0, %v24_v0  ;;  %v30_v8 = vld [vmem:[%s818_s4 + $0x8] sm:$0xff]  ;;  %v32_v9 = vld [vmem:[%s818_s4 + $0x18] sm:$0xff] }
   0x4   :  { %571 = vmatmul.mubr.msk.f32.vlgmr.msra.gmra.mrb[0].mxu0 %vm53_vm1, %v26_v2  ;;  %35 = vperm.xlu0 %642, %v29_v4  }
   0x5   :  { %573 = vmatprep.mubr.msk.f32.mxu0 %vm53_vm1, %v27_v3  ;;  %45 = vperm.xlu1 %643, %v31_v6  }
   0x6   :  { %11 = vsyncpa [#allocation3], 0  ;;  %v521_v10 = vld [vmem:[%s818_s4 + $0x20] sm:$0xff]  ;;  %v522_v11 = vld [vmem:[%s818_s4 + $0x28] sm:$0xff]  ;;  %vm188_vm2 = vcmask 261120   ;;  %v669_v63 = vmov 0.0|0.0  }
   0x7   :  { %v523_v12 = vld [vmem:[%s818_s4 + $0x30] sm:$0xff]  ;;  %v524_v13 = vld [vmem:[%s818_s4 + $0x38] sm:$0xff]  ;;  %v533_v14 = vld [vmem:[%s818_s4 + $0x40] sm:$0xff]  ;;  %vm670_vm3 = vmmov 0   ;;  %v671_v0 = vmov 0.0   ;;  %s672_s20 = smov [#allocation2]  }
   0x8   :  { %574 = vmatmul.mubr.msk.f32.gmra.mrb[2].mxu0 %vm53_vm1, %v28_v7  ;;  %40 = vperm.xlu0 %642, %v30_v8   ;;  %v534_v15 = vld [vmem:[%s818_s4 + $0x48] sm:$0xff]  ;;  %v535_v16 = vld [vmem:[%s818_s4 + $0x50] sm:$0xff]  ;;  %v536_v17 = vld [vmem:[%s818_s4 + $0x58] sm:$0xff]  ;;  %s508_s21 = sshll.u32 %s672_s20, 4  ;;  %s509_s21 = int_to_ptr.vmem [resolvable:$true] %s508_s21 }
   0x9   :  { %50 = vperm.xlu1 %643, %v32_v9   ;;  %v422_v18 = vld [vmem:[%s819_s5] sm:$0x3f]  ;;  %v160_v38 = vld [vmem:[%s816_s2 + $0x8] sm:$0xff]  ;;  %v161_v39 = vld [vmem:[%s816_s2 + $0x10] sm:$0xff]  ;;  %s644_s22 = scalar_lea.vmem %s509_s21, 128  ;;  %p649_p1 = scmp.lt.s32.totalorder %s509_s21, %s509_s21 }
   0xa   :  { %v159_v19 = vld [vmem:[%s816_s2] sm:$0xff]  ;;  %v162_v40 = vld [vmem:[%s816_s2 + $0x18] sm:$0xff]  ;;  %v530_v60 = vld [vmem:[%s816_s2 + $0x28] sm:$0xff]  ;;  %p645_p0 = scmp.ne.s32.totalorder %s509_s21, %s644_s22  ;;  %p650_p2 = scmp.lt.s32.totalorder %s644_s22, %s644_s22 }
   0xb   :  { %584 = vmatprep.mubr.msk.f32.mxu1 %vm188_vm2, %v159_v19  ;;  %v529_v41 = vld [vmem:[%s816_s2 + $0x20] sm:$0xff]  ;;  %v531_v61 = vld [vmem:[%s816_s2 + $0x30] sm:$0xff]  ;;  %v532_v62 = vld [vmem:[%s816_s2 + $0x38] sm:$0xff] }
   0xc   :  { %170 = vperm.xlu0 %642, %v521_v10   ;;  %598 = vmatprep.mubr.msk.f32.mxu0 %vm188_vm2, %v529_v41  ;;  %v421_v19 = vld [vmem:[%s817_s3] sm:$0x3f]  ;;  %p651_p3 = por %p650_p2, %p649_p1 }
   0xd   :  { %175 = vperm.xlu1 %643, %v522_v11  }
   0xe   :  { %p652_p4 = pnand %p651_p3, %p645_p0 }
  0x10   :  { %180 = vperm.xlu0 %642, %v523_v12  }
  0x11   :  { %185 = vperm.xlu1 %643, %v524_v13  }
  0x14   :  { %302 = vperm.xlu0 %642, %v533_v14  }
  0x15   :  { %307 = vperm.xlu1 %643, %v534_v15  }
  0x18   :  { %312 = vperm.xlu0 %642, %v535_v16  }
  0x19   :  { %317 = vperm.xlu1 %643, %v536_v17  }
  0x1c   :  { %425 = vperm.xlu0 %642, %v422_v18  }
  0x83   :  { %v36_v20 = vpop.permute.xlu0 %35 }
  0x84   :  { %v46_v21 = vpop.permute.xlu1 %45 }
  0x87   :  { %v41_v22 = vpop.permute.xlu0 %40 }
  0x88   :  { %v51_v28 = vpop.permute.xlu1 %50 }
  0x8b   :  { %v171_v43 = vpop.permute.xlu0 %170 }
  0x8c   :  { %v176_v42 = vpop.permute.xlu1 %175 }
  0x8f   :  { %v181_v52 = vpop.permute.xlu0 %180 }
  0x90   :  { %v186_v49 = vpop.permute.xlu1 %185 }
  0x93   :  { %v303_v2 = vpop.permute.xlu0 %302 }
  0x94   :  { %v308_v1 = vpop.permute.xlu1 %307 }
  0x97   :  { %v313_v11 = vpop.permute.xlu0 %312 }
  0x98   :  { %v318_v8 = vpop.permute.xlu1 %317 }
  0xd7   :  { %v572_v23 = vpop.f32.mrb[0].mxu0 }
  0xd8   :  { %v142_v24 = vadd.f32 %v572_v23, %v41_v22  ;;  %v136_v25 = vpop.f32.mrb[1].mxu0 }
  0xd9   :  { %v137_v26 = vadd.f32 %v136_v25, %v36_v20  ;;  %v426_v20 = vpop.permute.xlu0 %425 }
  0xda   :  { %v156_v27 = vmax.f32 %v142_v24, 0.0 }
  0xdb   :  { %v155_v29 = vmax.f32 %v137_v26, 0.0  ;;  %v575_v30 = vpop.f32.mrb[2].mxu0 }
  0xdc   :  { %v152_v31 = vadd.f32 %v575_v30, %v51_v28  ;;  %v146_v32 = vpop.f32.mrb[3].mxu0 }
  0xdd   :  { %v147_v33 = vadd.f32 %v146_v32, %v46_v21  ;;  %v615_v34 = vpack.c.bf16 %v156_v27, %v155_v29 }
  0xde   :  { %v158_v35 = vmax.f32 %v152_v31, 0.0 }
  0xdf   :  { %v157_v36 = vmax.f32 %v147_v33, 0.0  ;;  %616 = vmatprep.subr.bf16.mxu1 %v615_v34 }
  0xe0   :  { %618 = vmatpush3.bf16.msra.mxu1 %v615_v34 }
  0xe1   :  { %v619_v37 = vpack.c.bf16 %v158_v35, %v157_v36 }
  0xe3   :  { %620 = vmatprep.subr.bf16.mxu1 %v619_v37 }
  0xe4   :  { %622 = vmatpush3.bf16.msra.mxu1 %v619_v37 }
  0xe5   :  { %631 = vmatprep.subr.bf16.mxu1 %v669_v63 }
  0xe7   :  { %585 = vmatmul.mubr.msk.f32.vlgmr.msra.gmra.mrb[0].mxu1 %vm188_vm2, %v160_v38 }
  0xe8   :  { %587 = vmatprep.mubr.msk.f32.mxu1 %vm188_vm2, %v161_v39 }
  0xeb   :  { %588 = vmatmul.mubr.msk.f32.gmra.mrb[2].mxu1 %vm188_vm2, %v162_v40 }
  0xec   :  { %612 = vmatprep.mubr.msk.f32.mxu1 %vm670_vm3, %v671_v0 }
 0x1ba   :  { %v586_v44 = vpop.f32.mrb[0].mxu1 }
 0x1bb   :  { %v273_v45 = vadd.f32 %v586_v44, %v176_v42  ;;  %v267_v46 = vpop.f32.mrb[1].mxu1 }
 0x1bc   :  { %v268_v47 = vadd.f32 %v267_v46, %v171_v43 }
 0x1bd   :  { %v287_v48 = vmax.f32 %v273_v45, 0.0 }
 0x1be   :  { %v286_v50 = vmax.f32 %v268_v47, 0.0  ;;  %v589_v51 = vpop.f32.mrb[2].mxu1 }
 0x1bf   :  { %v283_v53 = vadd.f32 %v589_v51, %v186_v49  ;;  %v277_v54 = vpop.f32.mrb[3].mxu1 }
 0x1c0   :  { %v623_v55 = vpack.c.bf16 %v287_v48, %v286_v50  ;;  %v278_v56 = vadd.f32 %v277_v54, %v181_v52 }
 0x1c1   :  { %v289_v57 = vmax.f32 %v283_v53, 0.0 }
 0x1c2   :  { %v288_v58 = vmax.f32 %v278_v56, 0.0  ;;  %624 = vmatprep.subr.bf16.mxu0 %v623_v55 }
 0x1c3   :  { %626 = vmatpush3.bf16.msra.mxu0 %v623_v55 }
 0x1c4   :  { %v627_v59 = vpack.c.bf16 %v289_v57, %v288_v58 }
 0x1c6   :  { %628 = vmatprep.subr.bf16.mxu0 %v627_v59 }
 0x1c7   :  { %630 = vmatpush3.bf16.msra.mxu0 %v627_v59 }
 0x1ca   :  { %599 = vmatmul.mubr.msk.f32.vlgmr.msra.gmra.mrb[4].mxu0 %vm188_vm2, %v530_v60 }
 0x1cb   :  { %601 = vmatprep.mubr.msk.f32.mxu0 %vm188_vm2, %v531_v61 }
 0x1ce   :  { %602 = vmatmul.mubr.msk.f32.gmra.mrb[6].mxu0 %vm188_vm2, %v532_v62 }
 0x29d   :  { %v600_v3 = vpop.f32.mrb[4].mxu0 }
 0x29e   :  { %v404_v4 = vadd.f32 %v600_v3, %v308_v1  ;;  %v398_v5 = vpop.f32.mrb[5].mxu0 }
 0x29f   :  { %v399_v6 = vadd.f32 %v398_v5, %v303_v2 }
 0x2a0   :  { %v418_v7 = vmax.f32 %v404_v4, 0.0 }
 0x2a1   :  { %v417_v9 = vmax.f32 %v399_v6, 0.0  ;;  %v603_v10 = vpop.f32.mrb[6].mxu0 }
 0x2a2   :  { %v414_v12 = vadd.f32 %v603_v10, %v318_v8  ;;  %v408_v13 = vpop.f32.mrb[7].mxu0 }
 0x2a3   :  { %v632_v14 = vpack.c.bf16 %v418_v7, %v417_v9  ;;  %v409_v15 = vadd.f32 %v408_v13, %v313_v11 }
 0x2a4   :  { %v420_v16 = vmax.f32 %v414_v12, 0.0 }
 0x2a5   :  { %v419_v17 = vmax.f32 %v409_v15, 0.0  ;;  %633 = vmatpush3.bf16.msra.mxu1 %v632_v14 }
 0x2a6   :  { %634 = vmatprep.subr.bf16.mxu1 %v669_v63 }
 0x2a7   :  { %v635_v18 = vpack.c.bf16 %v420_v16, %v419_v17 }
 0x2a9   :  { %636 = vmatpush3.bf16.msra.mxu1 %v635_v18 }
 0x2ac   :  { %613 = vmatmul.mubr.msk.f32.vlgmr.msra.gmra.mrb[4].mxu1 %vm188_vm2, %v421_v19 }
 0x37f   :  { %v497_v21 = vpop.f32.mrb[4].mxu1 }
 0x380   :  { %v498_v22 = vadd.f32 %v497_v21, %v426_v20  ;;  %v614_v23 = vpop.f32.mrb[5].mxu1 }
 0x382   :  { %501 = vst [vmem:[#allocation2] sm:$0x3f] %v498_v22 }
 0x383   :  { %655 = shalt.err (!%p652_p4)
}
 0x384   :  { %s656_s3 = scalar_lea.hbm %s820_s6, 128 }
 0x385   :  { %p657_p5 = scmp.ne.s32.totalorder %s820_s6, %s656_s3  ;;  %p660_p6 = scmp.lt.u32.totalorder %s656_s3, %s820_s6 }
 0x387   :  { %p662_p7 = pnand %p660_p6, %p657_p5 }
 0x389   :  { %665 = shalt.err (!%p662_p7)
}
 0x38a   :  { %511 = dma.vmem_to_hbm [thread:$0]  %s509_s21, 128, %s820_s6, [#allocation3]  }
 0x38b   :  { %666 = dma.done.wait [#allocation3], 128  }
 0x38c   :  { %667 = vsyncadd [#allocation3], 4294967168 }
 0x38d   :  { %515 = vsyncpa [#allocation3], 1 }

</bundles_post_ra>
